<compile_context>
chip_gen: v7x
topology: tpu7x:2x2x1
jax: 0.10.0
libtpu: 0.0.40
codegen_flags: <defaults>
</compile_context>

<pallas_src>
import functools

import jax
import jax.numpy as jnp
from jax import lax
from jax.experimental import pallas as pl
from jax.experimental.pallas import tpu as pltpu


def _round_up(v: int, m: int) -> int:
    return (v + m - 1) // m * m


def _dot_xwT(x_tile, w_tile):
    # x_tile: (tm, tk), w_tile: (tn, tk) in PyTorch (H, F) layout.
    # Contract dim 1 of x with dim 1 of W -> (tm, tn), f32 MXU accumulation.
    return lax.dot_general(
        x_tile, w_tile,
        dimension_numbers=(((1,), (1,)), ((), ())),
        preferred_element_type=jnp.float32,
    )


def _linear_kernel_single_k(x_ref, w_ref, b_ref, o_ref):
    # Whole reduction dim fits in one tile: no scratch, single store.
    o_ref[...] = (_dot_xwT(x_ref[...], w_ref[...]) + b_ref[...]).astype(
        o_ref.dtype)


def _linear_kernel_multi_k(x_ref, w_ref, b_ref, o_ref, acc_ref):
    # x_ref: (tm, tk)  activations tile
    # w_ref: (tn, tk)  PyTorch-layout weight tile (H, F) -> contract dim 1
    # b_ref: (1,  tn)  bias tile for this H block
    # o_ref: (tm, tn)  output tile (resident across the K axis)
    # acc_ref: (tm, tn) f32 scratch accumulator
    k = pl.program_id(2)

    @pl.when(k == 0)
    def _():
        acc_ref[...] = jnp.zeros_like(acc_ref)

    acc_ref[...] += _dot_xwT(x_ref[...], w_ref[...])

    @pl.when(k == pl.num_programs(2) - 1)
    def _():
        o_ref[...] = (acc_ref[...] + b_ref[...]).astype(o_ref.dtype)


@functools.partial(jax.jit, static_argnames=("tm", "tn", "tk"))
def sender_forward(x, weight, bias, *, tm: int = 256, tn: int = 256,
                   tk: int = 1024):
    """Forward pass of Sender.

    x:      (B, F)  activations
    weight: (H, F)  PyTorch nn.Linear weight layout (NOT transposed)
    bias:   (H,)
    returns (B, H)
    """
    B, F = x.shape
    H, Fw = weight.shape
    assert F == Fw and bias.shape == (H,)

    # Adaptive tiles: keep all of a small B in one (sublane-padded) block and
    # keep the output lane-dense (tn a multiple of 128).
    tm = min(tm, _round_up(B, 8))
    tn = min(tn, _round_up(H, 128))
    tk = min(tk, _round_up(F, 128))

    Bp, Hp, Fp = _round_up(B, tm), _round_up(H, tn), _round_up(F, tk)

    xp = x if (Bp == B and Fp == F) else jnp.pad(x, ((0, Bp - B), (0, Fp - F)))
    wp = weight if (Hp == H and Fp == F) else jnp.pad(
        weight, ((0, Hp - H), (0, Fp - F)))
    bp = (bias if Hp == H else jnp.pad(bias, (0, Hp - H))).reshape(1, Hp)

    grid = (Bp // tm, Hp // tn, Fp // tk)
    single_k = grid[2] == 1

    kernel = _linear_kernel_single_k if single_k else _linear_kernel_multi_k
    scratch = [] if single_k else [pltpu.VMEM((tm, tn), jnp.float32)]

    out = pl.pallas_call(
        kernel,
        out_shape=jax.ShapeDtypeStruct((Bp, Hp), x.dtype),
        grid_spec=pltpu.PrefetchScalarGridSpec(
            num_scalar_prefetch=0,
            grid=grid,
            in_specs=[
                pl.BlockSpec((tm, tk), lambda i, j, k: (i, k)),   # x
                pl.BlockSpec((tn, tk), lambda i, j, k: (j, k)),   # W (H, F)
                pl.BlockSpec((1, tn), lambda i, j, k: (0, j)),    # bias
            ],
            out_specs=pl.BlockSpec((tm, tn), lambda i, j, k: (i, j)),
            scratch_shapes=scratch,
        ),
        compiler_params=pltpu.CompilerParams(
            dimension_semantics=("parallel", "parallel", "arbitrary")),
        cost_estimate=pl.CostEstimate(
            flops=2 * Bp * Fp * Hp,
            bytes_accessed=4 * (Bp * Fp + Fp * Hp + Bp * Hp + Hp),
            transcendentals=0),
    )(xp, wp, bp)

    if Bp != B or Hp != H:
        out = out[:B, :H]
    return out


if __name__ == "__main__":
    # Small shapes consistent with Sender(n_hidden, n_features).
    batch, n_features, n_hidden = 2, 16, 32

    key = jax.random.PRNGKey(0)
    kx, kw, kb = jax.random.split(key, 3)

    # nn.Linear-style init: U(-1/sqrt(F), 1/sqrt(F)).
    bound = 1.0 / (n_features ** 0.5)
    weight = jax.random.uniform(kw, (n_hidden, n_features),
                                minval=-bound, maxval=bound, dtype=jnp.float32)
    bias = jax.random.uniform(kb, (n_hidden,),
                              minval=-bound, maxval=bound, dtype=jnp.float32)
    x = jax.random.normal(kx, (batch, n_features), dtype=jnp.float32)

    out = sender_forward(x, weight, bias)
    out = jax.block_until_ready(out)

    # Reference check in plain JAX.
    ref = x @ weight.T + bias
    assert out.shape == (batch, n_hidden)
    assert jnp.allclose(out, ref, atol=1e-5, rtol=1e-5)

    # Also exercise the multi-K (accumulator) path at a larger shape.
    B2, F2, H2 = 64, 2304, 384
    k2x, k2w, k2b = jax.random.split(jax.random.PRNGKey(1), 3)
    x2 = jax.random.normal(k2x, (B2, F2), dtype=jnp.float32)
    w2 = jax.random.normal(k2w, (H2, F2), dtype=jnp.float32) * 0.02
    b2 = jax.random.normal(k2b, (H2,), dtype=jnp.float32)
    out2 = jax.block_until_ready(sender_forward(x2, w2, b2))
    ref2 = x2 @ w2.T + b2
    assert jnp.allclose(out2, ref2, atol=1e-3, rtol=1e-4)

    print("KERNEL_OK")
</pallas_src>

<mosaic_0001>
module attributes {stable_mosaic.version = 11 : i64} {
  func.func @_linear_kernel_single_k(%arg0: i32, %arg1: i32, %arg2: i32, %arg3: memref<8x128xf32, #tpu.memory_space<vmem>>, %arg4: memref<128x128xf32, #tpu.memory_space<vmem>>, %arg5: memref<1x128xf32, #tpu.memory_space<vmem>>, %arg6: memref<8x128xf32, #tpu.memory_space<vmem>>) attributes {dimension_semantics = [#tpu.dimension_semantics<parallel>, #tpu.dimension_semantics<parallel>, #tpu.dimension_semantics<arbitrary>], iteration_bounds = array<i64: 1, 1, 1>, scalar_prefetch = 0 : i64, scratch_operands = 0 : i64, tpu.core_type = #tpu.core_type<tc>, window_params = [{transform_indices = @transform_0, window_bounds = array<i64: 8, 128>}, {transform_indices = @transform_1, window_bounds = array<i64: 128, 128>}, {transform_indices = @transform_2, window_bounds = array<i64: 1, 128>}, {transform_indices = @transform_3, window_bounds = array<i64: 8, 128>}]} {
    %c0 = arith.constant 0 : index
    %c0_0 = arith.constant 0 : index
    %0 = vector.load %arg3[%c0, %c0_0] : memref<8x128xf32, #tpu.memory_space<vmem>>, vector<8x128xf32>
    %c0_1 = arith.constant 0 : index
    %c0_2 = arith.constant 0 : index
    %1 = vector.load %arg4[%c0_1, %c0_2] : memref<128x128xf32, #tpu.memory_space<vmem>>, vector<128x128xf32>
    %cst = arith.constant dense<0.000000e+00> : vector<8x128xf32>
    %2 = tpu.matmul %0, %1, %cst {dimension_numbers = #tpu.dot_dimension_numbers<[1], [1], [0], [0], [0, 0, 1, 0], [], []>} : vector<8x128xf32>, vector<128x128xf32>, vector<8x128xf32> -> vector<8x128xf32>
    %c0_3 = arith.constant 0 : index
    %c0_4 = arith.constant 0 : index
    %3 = vector.load %arg5[%c0_3, %c0_4] : memref<1x128xf32, #tpu.memory_space<vmem>>, vector<1x128xf32>
    %4 = vector.broadcast %3 : vector<1x128xf32> to vector<8x128xf32>
    %5 = arith.addf %2, %4 : vector<8x128xf32>
    %c0_5 = arith.constant 0 : index
    %c0_6 = arith.constant 0 : index
    %6 = vector.load %arg6[%c0_5, %c0_6] : memref<8x128xf32, #tpu.memory_space<vmem>>, vector<8x128xf32>
    tpu.vector_store %arg6[%c0_5, %c0_6], %5 {strides = array<i32>} : memref<8x128xf32, #tpu.memory_space<vmem>>, vector<8x128xf32>,
    return
  }
  func.func @transform_0(%arg0: i32, %arg1: i32, %arg2: i32) -> (i32, i32) {
    %c0_i32 = arith.constant 0 : i32
    return %arg0, %arg2 : i32, i32
  }
  func.func @transform_1(%arg0: i32, %arg1: i32, %arg2: i32) -> (i32, i32) {
    %c0_i32 = arith.constant 0 : i32
    return %arg1, %arg2 : i32, i32
  }
  func.func @transform_2(%arg0: i32, %arg1: i32, %arg2: i32) -> (i32, i32) {
    %c0_i32 = arith.constant 0 : i32
    %c0_i32_0 = arith.constant 0 : i32
    return %c0_i32, %arg1 : i32, i32
  }
  func.func @transform_3(%arg0: i32, %arg1: i32, %arg2: i32) -> (i32, i32) {
    %c0_i32 = arith.constant 0 : i32
    return %arg0, %arg1 : i32, i32
  }
}

</mosaic_0001>

<bundles_post_ra>
// kernel: sender_forward.1
= control target key start
LH: loop header
LB: loop body
LE: loop exit
PB: predicated region body
PF: predicated region fallthrough
CT: control target
= control target key end

     0   :  { %v193_v0 = vmov 0.0|0.0   ;;  %vm194_vm0 = vmmov 0   ;;  %v195_v3 = vmov 0.0   ;;  %s273_s1 = inlined_call_operand.vmem [shape: f32[128,128], index: 1, kind: input, shape index: {}]   ;;  %s274_s0 = inlined_call_operand.vmem [shape: f32[8,128], index: 0, kind: input, shape index: {}]   ;;  %s275_s2 = inlined_call_operand.vmem [shape: f32[1,128], index: 2, kind: input, shape index: {}]   ;;  %s276_s3 = inlined_call_operand.vmem [shape: f32[8,128], index: 3, kind: output, shape index: {}]  }
   0x1   :  { %166 = vmatprep.subr.bf16.mxu0 %v193_v0  ;;  %v15_v1 = vld [vmem:[%s273_s1] sm:$0xff]  ;;  %v16_v2 = vld [vmem:[%s273_s1 + $0x8] sm:$0xff]  ;;  %163 = vmatprep.mubr.msk.f32.mxu0 %vm194_vm0, %v195_v3  ;;  %v17_v5 = vld [vmem:[%s273_s1 + $0x10] sm:$0xff] }
   0x2   :  { %v167_v4 = vpack.c.bf16 %v16_v2, %v15_v1  ;;  %v18_v6 = vld [vmem:[%s273_s1 + $0x18] sm:$0xff]  ;;  %v19_v8 = vld [vmem:[%s273_s1 + $0x20] sm:$0xff]  ;;  %v20_v9 = vld [vmem:[%s273_s1 + $0x28] sm:$0xff] }
   0x3   :  { %v170_v7 = vpack.c.bf16 %v18_v6, %v17_v5  ;;  %v173_v10 = vpack.c.bf16 %v20_v9, %v19_v8  ;;  %v21_v11 = vld [vmem:[%s273_s1 + $0x30] sm:$0xff]  ;;  %v22_v12 = vld [vmem:[%s273_s1 + $0x38] sm:$0xff]  ;;  %v23_v14 = vld [vmem:[%s273_s1 + $0x40] sm:$0xff] }
   0x4   :  { %168 = vmatpush3.bf16.xpose.msra.mxu0 %v167_v4  ;;  %v176_v13 = vpack.c.bf16 %v22_v12, %v21_v11  ;;  %v24_v15 = vld [vmem:[%s273_s1 + $0x48] sm:$0xff]  ;;  %v25_v17 = vld [vmem:[%s273_s1 + $0x50] sm:$0xff]  ;;  %v26_v18 = vld [vmem:[%s273_s1 + $0x58] sm:$0xff] }
   0x5   :  { %169 = vmatprep.subr.bf16.mxu0 %v193_v0  ;;  %v179_v16 = vpack.c.bf16 %v24_v15, %v23_v14  ;;  %v182_v19 = vpack.c.bf16 %v26_v18, %v25_v17  ;;  %v27_v20 = vld [vmem:[%s273_s1 + $0x60] sm:$0xff]  ;;  %v28_v21 = vld [vmem:[%s273_s1 + $0x68] sm:$0xff]  ;;  %v29_v23 = vld [vmem:[%s273_s1 + $0x70] sm:$0xff] }
   0x6   :  { %v185_v22 = vpack.c.bf16 %v28_v21, %v27_v20  ;;  %v30_v24 = vld [vmem:[%s273_s1 + $0x78] sm:$0xff]  ;;  %v14_v26 = vld [vmem:[%s274_s0] sm:$0xff] }
   0x7   :  { %v188_v25 = vpack.c.bf16 %v30_v24, %v29_v23  ;;  %v113_v27 = vld [vmem:[%s275_s2] ss:$0 sm:$0xff] }
   0xc   :  { %171 = vmatpush3.bf16.xpose.msra.mxu0 %v170_v7 }
   0xd   :  { %172 = vmatprep.subr.bf16.mxu0 %v193_v0 }
  0x14   :  { %174 = vmatpush3.bf16.xpose.msra.mxu0 %v173_v10 }
  0x15   :  { %175 = vmatprep.subr.bf16.mxu0 %v193_v0 }
  0x1c   :  { %177 = vmatpush3.bf16.xpose.msra.mxu0 %v176_v13 }
  0x1d   :  { %178 = vmatprep.subr.bf16.mxu0 %v193_v0 }
  0x24   :  { %180 = vmatpush3.bf16.xpose.msra.mxu0 %v179_v16 }
  0x25   :  { %181 = vmatprep.subr.bf16.mxu0 %v193_v0 }
  0x2c   :  { %183 = vmatpush3.bf16.xpose.msra.mxu0 %v182_v19 }
  0x2d   :  { %184 = vmatprep.subr.bf16.mxu0 %v193_v0 }
  0x34   :  { %186 = vmatpush3.bf16.xpose.msra.mxu0 %v185_v22 }
  0x35   :  { %187 = vmatprep.subr.bf16.mxu0 %v193_v0 }
  0x3c   :  { %189 = vmatpush3.bf16.xpose.msra.mxu0 %v188_v25 }
  0x43   :  { %164 = vmatmul.mubr.f32.vlgmr.msra.gmra.mrb[0].mxu0 %v14_v26 }
 0x116   :  { %v104_v28 = vpop.f32.mrb[0].mxu0 }
 0x117   :  { %v105_v29 = vadd.f32 %v113_v27, %v104_v28  ;;  %v165_v30 = vpop.f32.mrb[1].mxu0 }
 0x119   :  { %108 = vst [vmem:[%s276_s3] sm:$0xff] %v105_v29 }

</bundles_post_ra>
